<compile_context>
chip_gen: v6e
topology: v6e:2x2x1
jax: 0.10.0
libtpu: 0.0.40
codegen_flags: <defaults>
</compile_context>

<pallas_src>
import jax
import jax.numpy as jnp
from jax.experimental import pallas as pl
from jax.experimental.pallas import tpu as pltpu


def _round_up(n, m):
    return ((n + m - 1) // m) * m


def _disc_kernel(xT_ref, w1T_ref, b1_ref, w2_ref, b2_ref, o_ref):
    # xT:  (in, Bt)   bf16/f32   batch on lanes
    # w1T: (H, in)    bf16/f32   resident weights (H = padded hidden, lane-friendly)
    # b1:  (H, 1)     f32        broadcasts over lanes (batch)
    # w2:  (H, 1)     f32        layer-2 weight column (zero-padded rows)
    # b2:  (1, 1)     f32
    # o:   (1, Bt)    f32        lane-dense output slab

    # Layer 1: h^T = w1^T @ x^T  (MXU, f32 accumulate), bias + tanh in f32 (EUP).
    hT = jnp.dot(w1T_ref[...], xT_ref[...], preferred_element_type=jnp.float32)
    hT = jnp.tanh(hT + b1_ref[...])                       # (H, Bt)

    # Layer 2 (output_size == 1): VPU multiply + sublane reduce instead of a
    # degenerate (H x 1) MXU matmul; result is already lane-dense (1, Bt).
    y = jnp.sum(hT * w2_ref[...], axis=0, keepdims=True) + b2_ref[...]

    # Sigmoid via the EUP-friendly identity sigmoid(y) = 0.5*(1 + tanh(y/2)).
    o_ref[...] = (0.5 * (1.0 + jnp.tanh(0.5 * y))).astype(o_ref.dtype)


def _prepare_params(w1, b1, w2, b2, mxu_dtype):
    """Zero-pad hidden to a lane-friendly width and lay weights out for the kernel."""
    in_dim, hidden = w1.shape
    H = _round_up(max(hidden, 128), 128)
    w1T = (
        jnp.zeros((H, in_dim), jnp.float32)
        .at[:hidden, :].set(w1.T.astype(jnp.float32))
        .astype(mxu_dtype)
    )
    b1c = jnp.zeros((H, 1), jnp.float32).at[:hidden, 0].set(
        b1.reshape(-1).astype(jnp.float32))
    w2c = jnp.zeros((H, 1), jnp.float32).at[:hidden, 0].set(
        w2[:, 0].astype(jnp.float32))
    b2v = b2.reshape(1, 1).astype(jnp.float32)
    return w1T, b1c, w2c, b2v, H


def discriminator_paper_forward(x, w1, b1, w2, b2, *, batch_tile=2048,
                                mxu_dtype=jnp.bfloat16):
    """x: (B, in). w1: (in, hidden). b1: (1, hidden). w2: (hidden, 1). b2: (1, 1)."""
    B, in_dim = x.shape
    hidden, out_dim = w2.shape
    if out_dim != 1:
        # The module spec hardcodes output_size=1; the lane-dense reduce path
        # below is specialized for that.
        raise NotImplementedError("Discriminator_paper has output_size=1")

    w1T, b1c, w2c, b2v, H = _prepare_params(w1, b1, w2, b2, mxu_dtype)

    # Batch tile: multiple of 128 lanes, capped at `batch_tile` rows (clamped
    # down to the padded batch so small batches stay a single tile).
    Bt = _round_up(min(batch_tile, _round_up(B, 128)), 128)
    B_pad = _round_up(B, Bt)
    num_tiles = B_pad // Bt

    # Transposed, batch-padded input: (in, B_pad). Padded columns are zero and
    # sliced off after the kernel.
    xT = jnp.zeros((in_dim, B_pad), mxu_dtype).at[:, :B].set(x.T.astype(mxu_dtype))

    out = pl.pallas_call(
        _disc_kernel,
        out_shape=jax.ShapeDtypeStruct((1, B_pad), jnp.float32),
        grid=(num_tiles,),
        in_specs=[
            pl.BlockSpec((in_dim, Bt), lambda i: (0, i)),   # x^T tile (pipelined)
            pl.BlockSpec((H, in_dim), lambda i: (0, 0)),    # w1^T  (resident)
            pl.BlockSpec((H, 1), lambda i: (0, 0)),         # b1    (resident)
            pl.BlockSpec((H, 1), lambda i: (0, 0)),         # w2    (resident)
            pl.BlockSpec((1, 1), lambda i: (0, 0)),         # b2    (resident)
        ],
        out_specs=pl.BlockSpec((1, Bt), lambda i: (0, i)),  # lane-dense output slab
        compiler_params=pltpu.CompilerParams(
            dimension_semantics=("parallel",)),             # 2x on v7x dual TCs
    )(xT, w1T, b1c, w2c, b2v)

    return out[0, :B].reshape(B, 1).astype(x.dtype)


def init_params(key, input_size=4, hidden_size=10, output_size=1):
    """Deterministic init mimicking torch.nn.Linear default (U[-1/sqrt(fan_in), 1/sqrt(fan_in)])."""
    k1, k2, k3, k4 = jax.random.split(key, 4)
    bound1 = 1.0 / jnp.sqrt(input_size)
    bound2 = 1.0 / jnp.sqrt(hidden_size)
    w1 = jax.random.uniform(k1, (input_size, hidden_size), jnp.float32, -bound1, bound1)
    b1 = jax.random.uniform(k2, (1, hidden_size), jnp.float32, -bound1, bound1)
    w2 = jax.random.uniform(k3, (hidden_size, output_size), jnp.float32, -bound2, bound2)
    b2 = jax.random.uniform(k4, (1, output_size), jnp.float32, -bound2, bound2)
    return w1, b1, w2, b2


if __name__ == "__main__":
    key = jax.random.PRNGKey(0)
    k_x, k_p, k_x2 = jax.random.split(key, 3)

    batch, input_size, hidden_size, output_size = 8, 4, 10, 1
    x = jax.random.normal(k_x, (batch, input_size), jnp.float32)
    w1, b1, w2, b2 = init_params(k_p, input_size, hidden_size, output_size)

    # Pure-JAX reference (same math as the PyTorch module, in f32).
    ref = jax.nn.sigmoid(jnp.tanh(x @ w1 + b1) @ w2 + b2)

    # 1) Exact-semantics check: f32 MXU operands -> must match the reference tightly.
    out_f32 = jax.block_until_ready(
        discriminator_paper_forward(x, w1, b1, w2, b2, mxu_dtype=jnp.float32))
    assert out_f32.shape == (batch, output_size)
    assert jnp.allclose(out_f32, ref, atol=1e-5, rtol=1e-5)

    # 2) Default path: bf16 MXU operands (v6e/v7x datapath), f32 accumulate +
    #    f32 activations -> small, bounded deviation from the f32 reference.
    out = jax.block_until_ready(discriminator_paper_forward(x, w1, b1, w2, b2))
    assert out.shape == (batch, output_size)
    assert jnp.allclose(out, ref, atol=2e-2, rtol=2e-2)

    # 3) Multi-tile grid check (exercises batch padding, pipelining & parallel axis).
    B2 = 4608
    x2 = jax.random.normal(k_x2, (B2, input_size), jnp.float32)
    ref2 = jax.nn.sigmoid(jnp.tanh(x2 @ w1 + b1) @ w2 + b2)
    out2 = jax.block_until_ready(
        discriminator_paper_forward(x2, w1, b1, w2, b2, batch_tile=1024))
    assert out2.shape == (B2, output_size)
    assert jnp.allclose(out2, ref2, atol=2e-2, rtol=2e-2)

    print("KERNEL_OK")
</pallas_src>

<mosaic_0001>
module attributes {stable_mosaic.version = 11 : i64} {
  func.func @_disc_kernel(%arg0: i32, %arg1: memref<4x128xf32, #tpu.memory_space<vmem>>, %arg2: memref<128x4xf32, #tpu.memory_space<vmem>>, %arg3: memref<128x1xf32, #tpu.memory_space<vmem>>, %arg4: memref<128x1xf32, #tpu.memory_space<vmem>>, %arg5: memref<1x1xf32, #tpu.memory_space<vmem>>, %arg6: memref<1x128xf32, #tpu.memory_space<vmem>>) attributes {dimension_semantics = [#tpu.dimension_semantics<parallel>], iteration_bounds = array<i64: 1>, scalar_prefetch = 0 : i64, scratch_operands = 0 : i64, tpu.core_type = #tpu.core_type<tc>, window_params = [{transform_indices = @transform_0, window_bounds = array<i64: 4, 128>}, {pipeline_mode = #tpu.pipeline_mode<synchronous>, transform_indices = @transform_1, window_bounds = array<i64: 128, 4>}, {pipeline_mode = #tpu.pipeline_mode<synchronous>, transform_indices = @transform_2, window_bounds = array<i64: 128, 1>}, {pipeline_mode = #tpu.pipeline_mode<synchronous>, transform_indices = @transform_3, window_bounds = array<i64: 128, 1>}, {pipeline_mode = #tpu.pipeline_mode<synchronous>, transform_indices = @transform_4, window_bounds = array<i64: 1, 1>}, {transform_indices = @transform_5, window_bounds = array<i64: 1, 128>}]} {
    %c0 = arith.constant 0 : index
    %c0_0 = arith.constant 0 : index
    %0 = vector.load %arg2[%c0, %c0_0] : memref<128x4xf32, #tpu.memory_space<vmem>>, vector<128x4xf32>
    %c0_1 = arith.constant 0 : index
    %c0_2 = arith.constant 0 : index
    %1 = vector.load %arg1[%c0_1, %c0_2] : memref<4x128xf32, #tpu.memory_space<vmem>>, vector<4x128xf32>
    %cst = arith.constant dense<0.000000e+00> : vector<128x128xf32>
    %2 = tpu.matmul %0, %1, %cst {dimension_numbers = #tpu.dot_dimension_numbers<[1], [0], [0], [1], [0, 0, 1, 1], [], []>} : vector<128x4xf32>, vector<4x128xf32>, vector<128x128xf32> -> vector<128x128xf32>
    %c0_3 = arith.constant 0 : index
    %c0_4 = arith.constant 0 : index
    %3 = vector.load %arg3[%c0_3, %c0_4] : memref<128x1xf32, #tpu.memory_space<vmem>>, vector<128x1xf32>
    %4 = vector.broadcast %3 : vector<128x1xf32> to vector<128x128xf32>
    %5 = arith.addf %2, %4 : vector<128x128xf32>
    %6 = math.tanh %5 : vector<128x128xf32>
    %c0_5 = arith.constant 0 : index
    %c0_6 = arith.constant 0 : index
    %7 = vector.load %arg4[%c0_5, %c0_6] : memref<128x1xf32, #tpu.memory_space<vmem>>, vector<128x1xf32>
    %8 = vector.broadcast %7 : vector<128x1xf32> to vector<128x128xf32>
    %9 = arith.mulf %6, %8 : vector<128x128xf32>
    %cst_7 = arith.constant dense<0.000000e+00> : vector<128xf32>
    %10 = vector.multi_reduction <add>, %9, %cst_7 [0] : vector<128x128xf32> to vector<128xf32>
    %11 = vector.shape_cast %10 : vector<128xf32> to vector<1x128xf32>
    %c0_8 = arith.constant 0 : index
    %c0_9 = arith.constant 0 : index
    %12 = vector.load %arg5[%c0_8, %c0_9] : memref<1x1xf32, #tpu.memory_space<vmem>>, vector<1x1xf32>
    %13 = vector.broadcast %12 : vector<1x1xf32> to vector<1x128xf32>
    %14 = arith.addf %11, %13 : vector<1x128xf32>
    %cst_10 = arith.constant 5.000000e-01 : f32
    %15 = vector.broadcast %cst_10 : f32 to vector<1x128xf32>
    %16 = arith.mulf %15, %14 : vector<1x128xf32>
    %17 = math.tanh %16 : vector<1x128xf32>
    %cst_11 = arith.constant 1.000000e+00 : f32
    %18 = vector.broadcast %cst_11 : f32 to vector<1x128xf32>
    %19 = arith.addf %18, %17 : vector<1x128xf32>
    %cst_12 = arith.constant 5.000000e-01 : f32
    %20 = vector.broadcast %cst_12 : f32 to vector<1x128xf32>
    %21 = arith.mulf %20, %19 : vector<1x128xf32>
    %c0_13 = arith.constant 0 : index
    %c0_14 = arith.constant 0 : index
    %22 = vector.load %arg6[%c0_13, %c0_14] : memref<1x128xf32, #tpu.memory_space<vmem>>, vector<1x128xf32>
    tpu.vector_store %arg6[%c0_13, %c0_14], %21 {strides = array<i32>} : memref<1x128xf32, #tpu.memory_space<vmem>>, vector<1x128xf32>,
    return
  }
  func.func @transform_0(%arg0: i32) -> (i32, i32) {
    %c0_i32 = arith.constant 0 : i32
    %c0_i32_0 = arith.constant 0 : i32
    return %c0_i32, %arg0 : i32, i32
  }
  func.func @transform_1(%arg0: i32) -> (i32, i32) {
    %c0_i32 = arith.constant 0 : i32
    %c0_i32_0 = arith.constant 0 : i32
    %c0_i32_1 = arith.constant 0 : i32
    return %c0_i32, %c0_i32_0 : i32, i32
  }
  func.func @transform_2(%arg0: i32) -> (i32, i32) {
    %c0_i32 = arith.constant 0 : i32
    %c0_i32_0 = arith.constant 0 : i32
    %c0_i32_1 = arith.constant 0 : i32
    return %c0_i32, %c0_i32_0 : i32, i32
  }
  func.func @transform_3(%arg0: i32) -> (i32, i32) {
    %c0_i32 = arith.constant 0 : i32
    %c0_i32_0 = arith.constant 0 : i32
    %c0_i32_1 = arith.constant 0 : i32
    return %c0_i32, %c0_i32_0 : i32, i32
  }
  func.func @transform_4(%arg0: i32) -> (i32, i32) {
    %c0_i32 = arith.constant 0 : i32
    %c0_i32_0 = arith.constant 0 : i32
    %c0_i32_1 = arith.constant 0 : i32
    return %c0_i32, %c0_i32_0 : i32, i32
  }
  func.func @transform_5(%arg0: i32) -> (i32, i32) {
    %c0_i32 = arith.constant 0 : i32
    %c0_i32_0 = arith.constant 0 : i32
    return %c0_i32, %arg0 : i32, i32
  }
}

</mosaic_0001>

<bundles_post_ra>
// kernel: tpu_custom_call.1
= control target key start
LH: loop header
LB: loop body
LE: loop exit
PB: predicated region body
PF: predicated region fallthrough
CT: control target
= control target key end

     0   :  { %s840_s0 = inlined_call_operand.vmem [shape: f32[4,128], index: 0, kind: input, shape index: {}]   ;;  %s841_s1 = inlined_call_operand.vmem [shape: f32[128,4], index: 1, kind: input, shape index: {}]   ;;  %s842_s2 = inlined_call_operand.vmem [shape: f32[128,1], index: 2, kind: input, shape index: {}]   ;;  %s843_s3 = inlined_call_operand.vmem [shape: f32[128,1], index: 3, kind: input, shape index: {}]   ;;  %s844_s4 = inlined_call_operand.<no memory space> [shape: f32[1,1], index: 4, kind: input, shape index: {}]   ;;  %s845_s5 = inlined_call_operand.hbm [shape: f32[1,128], index: 5, kind: output, shape index: {}]  }
   0x1   :  { %v10_v0 = vstv %s844_s4 }
   0x2   :  { %11 = vst [vmem:[#allocation2] sm:$0x1] %v10_v0 }
   0x3   :  { %v39_v1 = vld [vmem:[%s840_s0] sm:$0xf]  ;;  %vm185_vm0 = vcmask 1043456   ;;  %v42_v2 = vld [vmem:[%s842_s2 + $0x10] sm:$0xff]  ;;  %v635_v4 = vmov 0   ;;  %vm136_vm1 = vcmask 31744  }
   0x4   :  { %v40_v3 = vld [vmem:[%s842_s2] sm:$0xff]  ;;  %578 = vset.pattern.permute.xlu1 %v635_v4  ;;  %577 = vset.pattern.permute.xlu0 %v635_v4  ;;  %v24_v7 = vld [vmem:[%s841_s1 + $0x8] sm:$0xff]  ;;  %v43_v9 = vld [vmem:[%s842_s2 + $0x18] sm:$0xff] }
   0x5   :  { %547 = vmatprep.subr.msk.mxu0 %vm185_vm0, %v39_v1  ;;  %573 = vmatprep.subr.msk.mxu1 %vm185_vm0, %v39_v1  ;;  %v23_v5 = vld [vmem:[%s841_s1] sm:$0xff]  ;;  %v32_v8 = vld [vmem:[%s841_s1 + $0x48] sm:$0xff]  ;;  %v25_v11 = vld [vmem:[%s841_s1 + $0x10] sm:$0xff] }
   0x6   :  { %v31_v6 = vld [vmem:[%s841_s1 + $0x40] sm:$0xff]  ;;  %68 = vperm.xlu1 %578, %v42_v2   ;;  %58 = vperm.xlu0 %577, %v40_v3   ;;  %v41_v10 = vld [vmem:[%s842_s2 + $0x8] sm:$0xff]  ;;  %v33_v12 = vld [vmem:[%s841_s1 + $0x50] sm:$0xff] }
   0x7   :  { %548 = vmatpush3.msk.msra.mxu0 %vm185_vm0, %v39_v1  ;;  %574 = vmatpush3.msk.msra.mxu1 %vm185_vm0, %v39_v1  ;;  %v26_v13 = vld [vmem:[%s841_s1 + $0x18] sm:$0xff]  ;;  %v45_v15 = vld [vmem:[%s842_s2 + $0x28] sm:$0xff]  ;;  %v44_v16 = vld [vmem:[%s842_s2 + $0x20] sm:$0xff] }
   0x8   :  { %549 = vmatprep.mubr.msk.f32.mxu0 %vm136_vm1, %v23_v5  ;;  %561 = vmatprep.mubr.msk.f32.mxu1 %vm136_vm1, %v31_v6  ;;  %v34_v14 = vld [vmem:[%s841_s1 + $0x58] sm:$0xff]  ;;  %v27_v17 = vld [vmem:[%s841_s1 + $0x20] sm:$0xff]  ;;  %v28_v19 = vld [vmem:[%s841_s1 + $0x28] sm:$0xff] }
   0x9   :  { %550 = vmatmul.mubr.msk.f32.vlgmr.msra.gmra.mxu0 %vm136_vm1, %v24_v7  ;;  %562 = vmatmul.mubr.msk.f32.vlgmr.msra.gmra.mxu1 %vm136_vm1, %v32_v8  ;;  %v35_v18 = vld [vmem:[%s841_s1 + $0x60] sm:$0xff]  ;;  %v36_v20 = vld [vmem:[%s841_s1 + $0x68] sm:$0xff]  ;;  %v47_v21 = vld [vmem:[%s842_s2 + $0x38] sm:$0xff] }
   0xa   :  { %73 = vperm.xlu1 %578, %v43_v9   ;;  %63 = vperm.xlu0 %577, %v41_v10   ;;  %v46_v22 = vld [vmem:[%s842_s2 + $0x30] sm:$0xff]  ;;  %v30_v25 = vld [vmem:[%s841_s1 + $0x38] sm:$0xff]  ;;  %v49_v27 = vld [vmem:[%s842_s2 + $0x48] sm:$0xff] }
   0xb   :  { %552 = vmatprep.mubr.msk.f32.mxu0 %vm136_vm1, %v25_v11  ;;  %564 = vmatprep.mubr.msk.f32.mxu1 %vm136_vm1, %v33_v12  ;;  %v29_v23 = vld [vmem:[%s841_s1 + $0x30] sm:$0xff]  ;;  %v38_v26 = vld [vmem:[%s841_s1 + $0x78] sm:$0xff]  ;;  %v48_v28 = vld [vmem:[%s842_s2 + $0x40] sm:$0xff] }
   0xc   :  { %v37_v24 = vld [vmem:[%s841_s1 + $0x70] sm:$0xff] }
   0xd   :  { %553 = vmatmul.mubr.msk.f32.gmra.mxu0 %vm136_vm1, %v26_v13  ;;  %565 = vmatmul.mubr.msk.f32.gmra.mxu1 %vm136_vm1, %v34_v14 }
   0xe   :  { %83 = vperm.xlu1 %578, %v45_v15   ;;  %78 = vperm.xlu0 %577, %v44_v16  }
   0xf   :  { %555 = vmatprep.mubr.msk.f32.mxu0 %vm136_vm1, %v27_v17  ;;  %567 = vmatprep.mubr.msk.f32.mxu1 %vm136_vm1, %v35_v18 }
  0x11   :  { %556 = vmatmul.mubr.msk.f32.gmra.mxu0 %vm136_vm1, %v28_v19  ;;  %568 = vmatmul.mubr.msk.f32.gmra.mxu1 %vm136_vm1, %v36_v20 }
  0x12   :  { %93 = vperm.xlu1 %578, %v47_v21   ;;  %88 = vperm.xlu0 %577, %v46_v22  }
  0x13   :  { %558 = vmatprep.mubr.msk.f32.mxu0 %vm136_vm1, %v29_v23  ;;  %570 = vmatprep.mubr.msk.f32.mxu1 %vm136_vm1, %v37_v24 }
  0x14   :  { %12 = vsyncpa [#allocation4], 0  ;;  %v351_v29 = vld [vmem:[%s843_s3 + $0x8] sm:$0xff]  ;;  %v350_v30 = vld [vmem:[%s843_s3] sm:$0xff] }
  0x15   :  { %559 = vmatmul.mubr.msk.f32.gmra.mxu0 %vm136_vm1, %v30_v25  ;;  %571 = vmatmul.mubr.msk.f32.gmra.mxu1 %vm136_vm1, %v38_v26  ;;  %v352_v31 = vld [vmem:[%s843_s3 + $0x10] sm:$0xff]  ;;  %v353_v33 = vld [vmem:[%s843_s3 + $0x18] sm:$0xff]  ;;  %v354_v35 = vld [vmem:[%s843_s3 + $0x20] sm:$0xff] }
  0x16   :  { %103 = vperm.xlu1 %578, %v49_v27   ;;  %98 = vperm.xlu0 %577, %v48_v28   ;;  %v50_v32 = vld [vmem:[%s842_s2 + $0x50] sm:$0xff]  ;;  %v51_v34 = vld [vmem:[%s842_s2 + $0x58] sm:$0xff]  ;;  %v52_v36 = vld [vmem:[%s842_s2 + $0x60] sm:$0xff] }
  0x17   :  { %v355_v37 = vld [vmem:[%s843_s3 + $0x28] sm:$0xff]  ;;  %v356_v39 = vld [vmem:[%s843_s3 + $0x30] sm:$0xff]  ;;  %v357_v41 = vld [vmem:[%s843_s3 + $0x38] sm:$0xff] }
  0x18   :  { %v53_v38 = vld [vmem:[%s842_s2 + $0x68] sm:$0xff]  ;;  %v54_v40 = vld [vmem:[%s842_s2 + $0x70] sm:$0xff]  ;;  %v55_v42 = vld [vmem:[%s842_s2 + $0x78] sm:$0xff] }
  0x19   :  { %v359_v43 = vld [vmem:[%s843_s3 + $0x48] sm:$0xff]  ;;  %v358_v44 = vld [vmem:[%s843_s3 + $0x40] sm:$0xff]  ;;  %v361_v45 = vld [vmem:[%s843_s3 + $0x58] sm:$0xff] }
  0x1a   :  { %373 = vperm.xlu1 %578, %v351_v29   ;;  %368 = vperm.xlu0 %577, %v350_v30   ;;  %v360_v46 = vld [vmem:[%s843_s3 + $0x50] sm:$0xff]  ;;  %v363_v47 = vld [vmem:[%s843_s3 + $0x68] sm:$0xff]  ;;  %v362_v48 = vld [vmem:[%s843_s3 + $0x60] sm:$0xff] }
  0x1b   :  { %v365_v49 = vld [vmem:[%s843_s3 + $0x78] sm:$0xff]  ;;  %v364_v50 = vld [vmem:[%s843_s3 + $0x70] sm:$0xff]  ;;  %v483_v51 = vld [vmem:[#allocation2] sm:$0x1]  ;;  %s636_s3 = smov [#allocation3]  }
  0x1c   :  { %s505_s7 = sshll.u32 %s636_s3, 4  ;;  %s506_s7 = int_to_ptr.vmem [resolvable:$true] %s505_s7 }
  0x1d   :  { %s613_s8 = scalar_lea.vmem %s506_s7, 16  ;;  %s617_s9 = scalar_lea.vmem %s506_s7, 32 }
  0x1e   :  { %378 = vperm.xlu1 %578, %v352_v31   ;;  %108 = vperm.xlu0 %577, %v50_v32   ;;  %p614_p0 = scmp.ne.s32.totalorder %s506_s7, %s613_s8  ;;  %p618_p1 = scmp.lt.s32.totalorder %s506_s7, %s506_s7 }
  0x1f   :  { %p619_p2 = scmp.lt.s32.totalorder %s617_s9, %s613_s8 }
  0x21   :  { %p620_p3 = por %p619_p2, %p618_p1 }
  0x22   :  { %383 = vperm.xlu1 %578, %v353_v33   ;;  %113 = vperm.xlu0 %577, %v51_v34  }
  0x23   :  { %p621_p4 = pnand %p620_p3, %p614_p0 }
  0x26   :  { %388 = vperm.xlu1 %578, %v354_v35   ;;  %118 = vperm.xlu0 %577, %v52_v36  }
  0x2a   :  { %393 = vperm.xlu1 %578, %v355_v37   ;;  %123 = vperm.xlu0 %577, %v53_v38  }
  0x2e   :  { %398 = vperm.xlu1 %578, %v356_v39   ;;  %128 = vperm.xlu0 %577, %v54_v40  }
  0x32   :  { %403 = vperm.xlu1 %578, %v357_v41   ;;  %133 = vperm.xlu0 %577, %v55_v42  }
  0x36   :  { %413 = vperm.xlu1 %578, %v359_v43   ;;  %408 = vperm.xlu0 %577, %v358_v44  }
  0x3a   :  { %423 = vperm.xlu1 %578, %v361_v45   ;;  %418 = vperm.xlu0 %577, %v360_v46  }
  0x3e   :  { %433 = vperm.xlu1 %578, %v363_v47   ;;  %428 = vperm.xlu0 %577, %v362_v48  }
  0x42   :  { %443 = vperm.xlu1 %578, %v365_v49   ;;  %438 = vperm.xlu0 %577, %v364_v50  }
  0x46   :  { %486 = vperm.xlu0 %577, %v483_v51  }
  0x81   :  { %v59_v52 = vpop.permute.xlu0 %58  ;;  %v69_v53 = vpop.permute.xlu1 %68 }
  0x85   :  { %v64_v54 = vpop.permute.xlu0 %63  ;;  %v74_v55 = vpop.permute.xlu1 %73 }
  0x89   :  { %v79_v56 = vpop.permute.xlu0 %78  ;;  %v84_v57 = vpop.permute.xlu1 %83 }
  0x8d   :  { %v89_v58 = vpop.permute.xlu0 %88  ;;  %v94_v59 = vpop.permute.xlu1 %93 }
  0x91   :  { %v99_v60 = vpop.permute.xlu0 %98  ;;  %v104_v61 = vpop.permute.xlu1 %103 }
  0x95   :  { %v369_v62 = vpop.permute.xlu0 %368  ;;  %v374_v63 = vpop.permute.xlu1 %373 }
  0x99   :  { %v109_v0 = vpop.permute.xlu0 %108  ;;  %v379_v1 = vpop.permute.xlu1 %378 }
  0x9d   :  { %v114_v2 = vpop.permute.xlu0 %113  ;;  %v384_v3 = vpop.permute.xlu1 %383 }
  0xa1   :  { %v119_v9 = vpop.permute.xlu0 %118  ;;  %v389_v13 = vpop.permute.xlu1 %388 }
  0xa5   :  { %v124_v20 = vpop.permute.xlu0 %123  ;;  %v394_v22 = vpop.permute.xlu1 %393 }
  0xa9   :  { %v129_v30 = vpop.permute.xlu0 %128  ;;  %v399_v35 = vpop.permute.xlu1 %398 }
  0xad   :  { %v134_v43 = vpop.permute.xlu0 %133  ;;  %v404_v47 = vpop.permute.xlu1 %403 }
  0xc9   :  { %v551_v4 = vpop.f32.mrf.mxu0  ;;  %v563_v5 = vpop.f32.mrf.mxu1 }
  0xca   :  { %v261_v6 = vadd.f32 %v551_v4, %v64_v54  ;;  %v301_v33 = vadd.f32 %v563_v5, %v104_v61 }
  0xcb   :  { %v255_v7 = vpop.f32.mrf.mxu0  ;;  %v295_v8 = vpop.f32.mrf.mxu1 }
  0xcc   :  { %v256_v10 = vadd.f32 %v255_v7, %v59_v52  ;;  %579 = vtanh.f32 %v261_v6  ;;  %v296_v28 = vadd.f32 %v295_v8, %v99_v60 }
  0xcd   :  { %v554_v11 = vpop.f32.mrf.mxu0  ;;  %v566_v12 = vpop.f32.mrf.mxu1 }
  0xce   :  { %581 = vtanh.f32 %v256_v10  ;;  %v271_v14 = vadd.f32 %v554_v11, %v74_v55  ;;  %v311_v41 = vadd.f32 %v566_v12, %v114_v2 }
  0xcf   :  { %v265_v15 = vpop.f32.mrf.mxu0  ;;  %v305_v17 = vpop.f32.mrf.mxu1 }
  0xd0   :  { %v266_v16 = vadd.f32 %v265_v15, %v69_v53  ;;  %583 = vtanh.f32 %v271_v14  ;;  %v306_v37 = vadd.f32 %v305_v17, %v109_v0 }
  0xd1   :  { %v557_v18 = vpop.f32.mrf.mxu0  ;;  %v569_v24 = vpop.f32.mrf.mxu1 }
  0xd2   :  { %585 = vtanh.f32 %v266_v16  ;;  %v281_v19 = vadd.f32 %v557_v18, %v84_v57  ;;  %v321_v52 = vadd.f32 %v569_v24, %v124_v20  ;;  %v409_v57 = vpop.permute.xlu0 %408 }
  0xd3   :  { %v275_v21 = vpop.f32.mrf.mxu0  ;;  %v315_v31 = vpop.f32.mrf.mxu1 }
  0xd4   :  { %v276_v23 = vadd.f32 %v275_v21, %v79_v56  ;;  %587 = vtanh.f32 %v281_v19  ;;  %v316_v46 = vadd.f32 %v315_v31, %v119_v9 }
  0xd5   :  { %v560_v25 = vpop.f32.mrf.mxu0  ;;  %v572_v38 = vpop.f32.mrf.mxu1 }
  0xd6   :  { %589 = vtanh.f32 %v276_v23  ;;  %v291_v26 = vadd.f32 %v560_v25, %v94_v59  ;;  %v331_v61 = vadd.f32 %v572_v38, %v134_v43  ;;  %v419_v6 = vpop.permute.xlu0 %418 }
  0xd7   :  { %v285_v27 = vpop.f32.mrf.mxu0  ;;  %v325_v48 = vpop.f32.mrf.mxu1 }
  0xd8   :  { %v286_v29 = vadd.f32 %v285_v27, %v89_v58  ;;  %591 = vtanh.f32 %v291_v26  ;;  %v326_v56 = vadd.f32 %v325_v48, %v129_v30 }
  0xd9   :  { %v580_v32 = vpop.eup %579 }
  0xda   :  { %593 = vtanh.f32 %v286_v29  ;;  %v447_v40 = vmul.f32 %v580_v32, %v374_v63  ;;  %v414_v63 = vpop.permute.xlu1 %413  ;;  %v429_v17 = vpop.permute.xlu0 %428 }
  0xdb   :  { %v582_v34 = vpop.eup %581  ;;  %595 = vtanh.f32 %v296_v28 }
  0xdc   :  { %v446_v36 = vmul.f32 %v582_v34, %v369_v62  ;;  %597 = vtanh.f32 %v301_v33  ;;  %v489_v34 = vlaneseq }
  0xdd   :  { %v584_v39 = vpop.eup %583  ;;  %599 = vtanh.f32 %v306_v37 }
  0xde   :  { %v462_v44 = vadd.f32 %v447_v40, %v446_v36  ;;  %v449_v50 = vmul.f32 %v584_v39, %v384_v3  ;;  %601 = vtanh.f32 %v311_v41  ;;  %v424_v10 = vpop.permute.xlu1 %423  ;;  %v439_v28 = vpop.permute.xlu0 %438  ;;  %v490_v37 = vshrl.u32 %v489_v34, 7 }
  0xdf   :  { %v586_v42 = vpop.eup %585  ;;  %603 = vtanh.f32 %v316_v46 }
  0xe0   :  { %v448_v45 = vmul.f32 %v586_v42, %v379_v1  ;;  %605 = vtanh.f32 %v321_v52  ;;  %v491_v40 = vsub.s32 0, %v490_v37 }
  0xe1   :  { %v588_v49 = vpop.eup %587  ;;  %607 = vtanh.f32 %v326_v56 }
  0xe2   :  { %v463_v51 = vadd.f32 %v462_v44, %v448_v45  ;;  %v451_v59 = vmul.f32 %v588_v49, %v394_v22  ;;  %609 = vtanh.f32 %v331_v61  ;;  %v434_v21 = vpop.permute.xlu1 %433  ;;  %v487_v42 = vpop.permute.xlu0 %486 }
  0xe3   :  { %v590_v53 = vpop.eup %589  ;;  %v492_v44 = vrot.slane %v487_v42, %v491_v40 }
  0xe4   :  { %v450_v54 = vmul.f32 %v590_v53, %v389_v13  ;;  %v464_v55 = vadd.f32 %v463_v51, %v449_v50 }
  0xe5   :  { %v592_v58 = vpop.eup %591 }
  0xe6   :  { %v465_v60 = vadd.f32 %v464_v55, %v450_v54  ;;  %v453_v3 = vmul.f32 %v592_v58, %v404_v47  ;;  %v444_v31 = vpop.permute.xlu1 %443 }
  0xe7   :  { %v594_v62 = vpop.eup %593 }
  0xe8   :  { %v452_v0 = vmul.f32 %v594_v62, %v399_v35  ;;  %v466_v1 = vadd.f32 %v465_v60, %v451_v59  ;;  %v596_v2 = vpop.eup %595 }
  0xe9   :  { %v598_v5 = vpop.eup %597  ;;  %v454_v7 = vmul.f32 %v596_v2, %v409_v57 }
  0xea   :  { %v467_v4 = vadd.f32 %v466_v1, %v452_v0  ;;  %v600_v9 = vpop.eup %599  ;;  %v455_v11 = vmul.f32 %v598_v5, %v414_v63 }
  0xeb   :  { %v602_v13 = vpop.eup %601  ;;  %v456_v14 = vmul.f32 %v600_v9, %v419_v6 }
  0xec   :  { %v468_v8 = vadd.f32 %v467_v4, %v453_v3  ;;  %v604_v16 = vpop.eup %603  ;;  %v457_v18 = vmul.f32 %v602_v13, %v424_v10 }
  0xed   :  { %v606_v20 = vpop.eup %605  ;;  %v458_v22 = vmul.f32 %v604_v16, %v429_v17 }
  0xee   :  { %v469_v12 = vadd.f32 %v468_v8, %v454_v7  ;;  %v608_v24 = vpop.eup %607  ;;  %v459_v25 = vmul.f32 %v606_v20, %v434_v21 }
  0xef   :  { %v610_v27 = vpop.eup %609  ;;  %v460_v29 = vmul.f32 %v608_v24, %v439_v28 }
  0xf0   :  { %v470_v15 = vadd.f32 %v469_v12, %v455_v11  ;;  %v461_v32 = vmul.f32 %v610_v27, %v444_v31 }
  0xf2   :  { %v471_v19 = vadd.f32 %v470_v15, %v456_v14 }
  0xf4   :  { %v472_v23 = vadd.f32 %v471_v19, %v457_v18 }
  0xf6   :  { %v473_v26 = vadd.f32 %v472_v23, %v458_v22 }
  0xf8   :  { %v474_v30 = vadd.f32 %v473_v26, %v459_v25 }
  0xfa   :  { %v475_v33 = vadd.f32 %v474_v30, %v460_v29 }
  0xfc   :  { %v476_v35 = vadd.f32 %v475_v33, %v461_v32 }
  0xfe   :  { %v477_v36 = vrot.slane %v476_v35, 4 }
 0x100   :  { %v478_v38 = vadd.f32 %v477_v36, %v476_v35 }
 0x102   :  { %v479_v39 = vrot.slane %v478_v38, 2 }
 0x104   :  { %v480_v41 = vadd.f32 %v479_v39, %v478_v38 }
 0x106   :  { %v481_v43 = vrot.slane %v480_v41, 1 }
 0x108   :  { %v482_v45 = vadd.f32 %v481_v43, %v480_v41 }
 0x10a   :  { %v493_v46 = vadd.f32 %v492_v44, %v482_v45 }
 0x10c   :  { %v494_v47 = vmul.f32 0.5, %v493_v46 }
 0x10e   :  { %611 = vtanh.f32 %v494_v47 }
 0x11b   :  { %v612_v48 = vpop.eup %611 }
 0x11c   :  { %v496_v49 = vadd.f32 1.0, %v612_v48 }
 0x11e   :  { %v497_v50 = vmul.f32 0.5, %v496_v49 }
 0x120   :  { %498 = vst [vmem:[#allocation3] sm:$0x1] %v497_v50 }
 0x121   :  { %624 = shalt.err (!%p621_p4)
}
 0x122   :  { %508 = dma.vmem_to_hbm [thread:$0]  %s506_s7, 16, %s845_s5, [#allocation4]  }
 0x123   :  { %633 = dma.done.wait [#allocation4], 16  }
 0x124   :  { %634 = vsyncadd [#allocation4], 4294967280 }
 0x125   :  { %512 = vsyncpa [#allocation4], 1 }

</bundles_post_ra>
